<compile_context>
chip_gen: v5e
topology: v5e:2x2
jax: 0.10.0
libtpu: 0.0.40
codegen_flags: <defaults>
</compile_context>

<pallas_src>
import jax
import jax.numpy as jnp
from jax.experimental import pallas as pl
from jax.experimental.pallas import tpu as pltpu


# ----------------------------------------------------------------------------
# Config standing in for `Parameters.training.loss.*` of the original repo.
# ----------------------------------------------------------------------------
class _LossConfig:
    use_flow_loss = True
    use_graph_loss = False   # TODO(synk): BatchGraphL2 is not defined in the reference source; graph loss disabled.
    use_warp_loss = True
    use_mask_loss = True
    use_fixed_mask_loss_neg_wrt_pos_weight = False
    mask_neg_wrt_pos_weight = 5.0


# ----------------------------------------------------------------------------
# Tiling helpers
# ----------------------------------------------------------------------------
_LANES = 128
_SUBLANES = 8
_MAX_ROWS = 2048          # 2048 x 128 f32 = 1 MiB per input plane per grid step


def _round_up(x, m):
    return ((x + m - 1) // m) * m


def _vmem_budget():
    """(buffered-tile byte budget, vmem_limit_bytes) tuned per TPU generation."""
    cap = 64 << 20                       # conservative default (v7x physical VMEM)
    try:
        cap = int(getattr(pltpu.get_tpu_info(), "vmem_capacity_bytes", cap))
    except Exception:
        pass
    budget = min(max(cap // 8, 8 << 20), 16 << 20)   # 16 MiB on v5e/v6e, 8 MiB on v7x
    limit = min(cap // 2, 48 << 20)                  # scoped-VMEM limit for Mosaic
    return budget, limit


def _pick_rows(R, n_planes, budget_bytes):
    """Rows (sublanes) per grid step: largest multiple of 8 whose double-buffered
    input planes fit the budget, capped at _MAX_ROWS and the padded row count."""
    per_row = n_planes * 2 * _LANES * 4              # double-buffered f32 planes
    ts = budget_bytes // per_row
    ts = min(int(ts), _MAX_ROWS, R)
    return max(_SUBLANES, (ts // _SUBLANES) * _SUBLANES)


def _pad_and_tile(x2d, pad_value=0.0):
    """(B, M) -> (B, R, 128), M padded up to a multiple of 8*128."""
    B, M = x2d.shape
    Mp = _round_up(M, _SUBLANES * _LANES)
    if Mp != M:
        x2d = jnp.pad(x2d, ((0, 0), (0, Mp - M)), constant_values=pad_value)
    return x2d.reshape(B, Mp // _LANES, _LANES)


# ----------------------------------------------------------------------------
# Pallas kernels
# ----------------------------------------------------------------------------
def _make_masked_norm_kernel(C, TS, R, kind, epsilon, q):
    """Masked channel-norm reduction over (TS, 128) sublane-dense tiles.

    refs: gt (C,TS,128), pred (C,TS,128), mask (TS,128),
          out_loss (8,128), out_cnt (8,128)   [per-batch partial sums]
    scratch: acc_loss, acc_cnt (8,128)
    """
    ragged = (R % TS) != 0

    def kernel(gt_ref, pred_ref, mask_ref, out_loss_ref, out_cnt_ref,
               acc_loss, acc_cnt):
        t = pl.program_id(1)

        @pl.when(t == 0)
        def _init():
            acc_loss[...] = jnp.zeros_like(acc_loss)
            acc_cnt[...] = jnp.zeros_like(acc_cnt)

        m = mask_ref[...].astype(jnp.float32)                       # (TS, 128)

        red = None
        for c in range(C):                                          # static unroll
            d = pred_ref[c].astype(jnp.float32) - gt_ref[c].astype(jnp.float32)
            contrib = d * d if kind == "l2" else jnp.abs(d)
            red = contrib if red is None else red + contrib

        if kind == "l2":
            val = jnp.sqrt(red)
        else:                                                       # RobustL1
            val = jnp.power(red + epsilon, q)

        vm = val * m
        cm = m
        if ragged:                     # mask out-of-bounds rows of the last tile
            rows = t * TS + jax.lax.broadcasted_iota(jnp.int32, (TS, _LANES), 0)
            ok = rows < R
            vm = jnp.where(ok, vm, 0.0)
            cm = jnp.where(ok, cm, 0.0)

        # Partial sublane reduce: (TS,128) -> (8,128) via vreg-aligned adds.
        acc_loss[...] += jnp.sum(vm.reshape(TS // _SUBLANES, _SUBLANES, _LANES), axis=0)
        acc_cnt[...] += jnp.sum(cm.reshape(TS // _SUBLANES, _SUBLANES, _LANES), axis=0)

        @pl.when(t == pl.num_programs(1) - 1)
        def _fin():
            out_loss_ref[...] = acc_loss[...]
            out_cnt_ref[...] = acc_cnt[...]

    return kernel


def _make_mask_bce_kernel(TS, R):
    """Weighted-BCE partial sums over (TS, 128) tiles.

    Accumulates: total masked BCE, positive-masked BCE, #pos, #valid.
    (neg loss / neg count are derived outside: gt is binary in the reference.)
    """
    ragged = (R % TS) != 0

    def kernel(gt_ref, pred_ref, valid_ref,
               out_tot, out_pos, out_pcnt, out_vcnt,
               acc_tot, acc_pos, acc_pcnt, acc_vcnt):
        t = pl.program_id(1)

        @pl.when(t == 0)
        def _init():
            acc_tot[...] = jnp.zeros_like(acc_tot)
            acc_pos[...] = jnp.zeros_like(acc_pos)
            acc_pcnt[...] = jnp.zeros_like(acc_pcnt)
            acc_vcnt[...] = jnp.zeros_like(acc_vcnt)

        gt = gt_ref[...].astype(jnp.float32)
        pred = pred_ref[...].astype(jnp.float32)
        valid = valid_ref[...].astype(jnp.float32)

        if ragged:                     # neutralize out-of-bounds rows (stale VMEM)
            rows = t * TS + jax.lax.broadcasted_iota(jnp.int32, (TS, _LANES), 0)
            ok = rows < R
            gt = jnp.where(ok, gt, 0.0)
            pred = jnp.where(ok, pred, 0.5)
            valid = jnp.where(ok, valid, 0.0)

        # Single clamped log (1 EUP op/elem); identical to torch BCELoss for binary gt.
        p_sel = jnp.where(gt > 0.5, pred, 1.0 - pred)
        bce = -jnp.maximum(jnp.log(p_sel), -100.0)
        vb = valid * bce

        def _acc(acc, x):
            acc[...] += jnp.sum(x.reshape(TS // _SUBLANES, _SUBLANES, _LANES), axis=0)

        _acc(acc_tot, vb)              # total masked BCE
        _acc(acc_pos, gt * vb)         # positive-masked BCE
        _acc(acc_pcnt, valid * gt)     # number of valid positives
        _acc(acc_vcnt, valid)          # number of valid pixels

        @pl.when(t == pl.num_programs(1) - 1)
        def _fin():
            out_tot[...] = acc_tot[...]
            out_pos[...] = acc_pos[...]
            out_pcnt[...] = acc_pcnt[...]
            out_vcnt[...] = acc_vcnt[...]

    return kernel


# ----------------------------------------------------------------------------
# pallas_call wrappers
# ----------------------------------------------------------------------------
def _masked_norm_partials(gt4, pred4, mask3, *, kind, epsilon, q):
    """gt4/pred4: (B, C, R, 128); mask3: (B, R, 128).
    Returns per-batch (B, 8, 128) partial loss sums and valid counts."""
    B, C, R, _ = gt4.shape
    budget, limit = _vmem_budget()
    TS = _pick_rows(R, n_planes=2 * C + 1, budget_bytes=budget)
    T = pl.cdiv(R, TS)

    part = jax.ShapeDtypeStruct((B, _SUBLANES, _LANES), jnp.float32)
    out_spec = pl.BlockSpec((None, _SUBLANES, _LANES), lambda b, t: (b, 0, 0))

    return pl.pallas_call(
        _make_masked_norm_kernel(C, TS, R, kind, epsilon, q),
        out_shape=(part, part),
        grid=(B, T),
        in_specs=[
            pl.BlockSpec((None, C, TS, _LANES), lambda b, t: (b, 0, t, 0)),
            pl.BlockSpec((None, C, TS, _LANES), lambda b, t: (b, 0, t, 0)),
            pl.BlockSpec((None, TS, _LANES), lambda b, t: (b, t, 0)),
        ],
        out_specs=(out_spec, out_spec),
        scratch_shapes=[pltpu.VMEM((_SUBLANES, _LANES), jnp.float32)] * 2,
        compiler_params=pltpu.CompilerParams(
            dimension_semantics=("parallel", "arbitrary"),
            vmem_limit_bytes=limit),
    )(gt4, pred4, mask3)


def _mask_bce_partials(gt3, pred3, valid3):
    """gt3/pred3/valid3: (B, R, 128). Returns 4 per-batch (B, 8, 128) partials."""
    B, R, _ = gt3.shape
    budget, limit = _vmem_budget()
    TS = _pick_rows(R, n_planes=3, budget_bytes=budget)
    T = pl.cdiv(R, TS)

    part = jax.ShapeDtypeStruct((B, _SUBLANES, _LANES), jnp.float32)
    in_spec = pl.BlockSpec((None, TS, _LANES), lambda b, t: (b, t, 0))
    out_spec = pl.BlockSpec((None, _SUBLANES, _LANES), lambda b, t: (b, 0, 0))

    return pl.pallas_call(
        _make_mask_bce_kernel(TS, R),
        out_shape=(part,) * 4,
        grid=(B, T),
        in_specs=[in_spec, in_spec, in_spec],
        out_specs=(out_spec,) * 4,
        scratch_shapes=[pltpu.VMEM((_SUBLANES, _LANES), jnp.float32)] * 4,
        compiler_params=pltpu.CompilerParams(
            dimension_semantics=("parallel", "arbitrary"),
            vmem_limit_bytes=limit),
    )(gt3, pred3, valid3)


# ----------------------------------------------------------------------------
# Loss modules (JAX glue around the Pallas reductions)
# ----------------------------------------------------------------------------
def _per_batch_average(loss_sum, valid_cnt):
    """Mean of per-batch means over batches with >=1 valid element (0.0 if none).
    Matches the reference L2 / RobustL1 / L2_Warp normalization."""
    has_valid = valid_cnt > 0.0
    per = jnp.where(has_valid, loss_sum / jnp.where(has_valid, valid_cnt, 1.0), 0.0)
    nvb = jnp.sum(has_valid.astype(jnp.float32))
    return jnp.where(nvb > 0.0, jnp.sum(per) / nvb, 0.0)


def _masked_channel_norm_loss(gt, pred, mask0, *, kind, epsilon=0.01, q=0.4):
    """gt/pred: (B, C, spatial...) with C in {2, 3}; mask0: (B, spatial...) =
    channel-0 validity mask.  Returns the scalar loss."""
    B, C = gt.shape[0], gt.shape[1]
    assert C in (2, 3), gt.shape

    gt2 = gt.reshape(B, C, -1)
    pred2 = pred.reshape(B, C, -1)
    m2 = mask0.reshape(B, -1)
    M = gt2.shape[-1]
    Mp = _round_up(M, _SUBLANES * _LANES)
    if Mp != M:
        pad3 = ((0, 0), (0, 0), (0, Mp - M))
        gt2 = jnp.pad(gt2, pad3)
        pred2 = jnp.pad(pred2, pad3)
        m2 = jnp.pad(m2, ((0, 0), (0, Mp - M)))
    R = Mp // _LANES

    gt4 = gt2.reshape(B, C, R, _LANES)
    pred4 = pred2.reshape(B, C, R, _LANES)
    m3 = m2.reshape(B, R, _LANES)

    loss_part, cnt_part = _masked_norm_partials(gt4, pred4, m3,
                                                kind=kind, epsilon=epsilon, q=q)
    return _per_batch_average(jnp.sum(loss_part, axis=(1, 2)),
                              jnp.sum(cnt_part, axis=(1, 2)))


class L2Loss:
    """Equivalent of alignment.loss.L2 (flow loss)."""

    def __call__(self, flow_gt, flow_pred, flow_mask):
        return _masked_channel_norm_loss(flow_gt, flow_pred, flow_mask[:, 0],
                                         kind="l2")


class RobustL1Loss:
    """Equivalent of alignment.loss.RobustL1 (flow loss)."""

    def __init__(self, epsilon=0.01, q=0.4):
        self.epsilon = epsilon
        self.q = q

    def __call__(self, flow_gt, flow_pred, flow_mask):
        return _masked_channel_norm_loss(flow_gt, flow_pred, flow_mask[:, 0],
                                         kind="robust_l1",
                                         epsilon=self.epsilon, q=self.q)


class L2WarpLoss:
    """Equivalent of alignment.loss.L2_Warp (warped-points loss)."""

    def __call__(self, points_gt, points_pred, points_mask):
        assert points_gt.shape[2] == 3, points_gt.shape
        # Small (B, N, 3) -> (B, 3, N) transpose so coordinates are channel-major
        # and the spatial axis is lane/sublane dense; reuse the shared kernel.
        gt = jnp.transpose(points_gt, (0, 2, 1))
        pred = jnp.transpose(points_pred, (0, 2, 1))
        return _masked_channel_norm_loss(gt, pred, points_mask[:, :, 0], kind="l2")


def mask_bce_loss(mask_gt, mask_pred, valid_pixels):
    """Equivalent of DeformLoss.mask_bce_loss (weighted BCE over valid pixels)."""
    B = mask_gt.shape[0]
    gt = _pad_and_tile(mask_gt.reshape(B, -1))
    pred = _pad_and_tile(mask_pred.reshape(B, -1), pad_value=0.5)
    valid = _pad_and_tile(valid_pixels.reshape(B, -1))

    tot_p, pos_p, pcnt_p, vcnt_p = _mask_bce_partials(gt, pred, valid)
    total_bce = jnp.sum(tot_p)
    pos_loss = jnp.sum(pos_p)
    neg_loss = total_bce - pos_loss                 # gt is binary in the reference
    pos_num = jnp.sum(pcnt_p)
    num_valid = jnp.sum(vcnt_p)
    neg_num = num_valid - pos_num

    if _LossConfig.use_fixed_mask_loss_neg_wrt_pos_weight:
        pos_weight = jnp.float32(_LossConfig.mask_neg_wrt_pos_weight)
    else:
        # Guard against pos_num == 0 (reference would produce inf/NaN); with no
        # positives the weighted positive term is 0 anyway.
        pos_weight = jnp.where(pos_num > 0.0,
                               neg_num / jnp.maximum(pos_num, 1.0), 1.0)
    total = pos_weight * pos_loss + neg_loss
    return jnp.where(num_valid > 0.0, total / num_valid, 0.0)


class DeformLoss:
    """JAX/Pallas port of alignment.loss.DeformLoss.forward."""

    def __init__(self, lambda_flow=0.0, lambda_graph=0.0, lambda_warp=0.0,
                 lambda_mask=0.0, flow_loss_type="L2"):
        self.lambda_flow = lambda_flow
        self.lambda_graph = lambda_graph
        self.lambda_warp = lambda_warp
        self.lambda_mask = lambda_mask
        if flow_loss_type == "RobustL1":
            self.flow_loss = RobustL1Loss()
        elif flow_loss_type == "L2":
            self.flow_loss = L2Loss()
        else:
            raise Exception(f"Loss type {flow_loss_type} is not defined.")
        self.warp_loss = L2WarpLoss()

    def forward(self, flow_gts, flow_preds, flow_masks,
                deformations_gt, deformations_pred, deformations_validity,
                warped_points_gt, warped_points_pred, warped_points_mask,
                valid_solve, num_nodes_vec, mask_pred, mask_gt, valid_pixels,
                evaluate=False):
        d_total = jnp.zeros((1,), dtype=jnp.float32)

        d_flow = None
        if _LossConfig.use_flow_loss:
            if len(flow_gts) == 1:
                d_flow = self.flow_loss(flow_gts[0], flow_preds[0], flow_masks[0])
            elif len(flow_gts) > 1:
                d_flow = sum(self.flow_loss(g, p, m)
                             for g, p, m in zip(flow_gts, flow_preds, flow_masks))
            d_total = d_total + self.lambda_flow * d_flow

        d_graph = None
        if _LossConfig.use_graph_loss:
            # TODO(synk): BatchGraphL2 is not part of the provided reference source.
            pass

        d_warp = None
        if _LossConfig.use_warp_loss:
            d_warp = self.warp_loss(warped_points_gt, warped_points_pred,
                                    warped_points_mask)
            d_total = d_total + self.lambda_warp * d_warp

        d_mask = None
        if _LossConfig.use_mask_loss:
            d_mask = mask_bce_loss(mask_gt, mask_pred, valid_pixels)
            d_total = d_total + self.lambda_mask * d_mask

        if evaluate:
            return d_total, d_flow, d_graph, d_warp, d_mask
        return d_total

    __call__ = forward


# ----------------------------------------------------------------------------
# Main
# ----------------------------------------------------------------------------
if __name__ == "__main__":
    key = jax.random.PRNGKey(0)
    ks = jax.random.split(key, 12)

    B, H, W = 2, 16, 16   # flow maps (NCHW with C=2)
    N = 256               # warped points
    G = 8                 # graph nodes (unused; graph loss disabled)

    flow_gt = jax.random.normal(ks[0], (B, 2, H, W), jnp.float32)
    flow_pred = jax.random.normal(ks[1], (B, 2, H, W), jnp.float32)
    fm = (jax.random.uniform(ks[2], (B, 1, H, W)) > 0.3).astype(jnp.float32)
    flow_mask = jnp.broadcast_to(fm, (B, 2, H, W))

    warped_points_gt = jax.random.normal(ks[3], (B, N, 3), jnp.float32)
    warped_points_pred = jax.random.normal(ks[4], (B, N, 3), jnp.float32)
    wm = (jax.random.uniform(ks[5], (B, N, 1)) > 0.3).astype(jnp.float32)
    warped_points_mask = jnp.broadcast_to(wm, (B, N, 3))

    mask_gt = (jax.random.uniform(ks[6], (B, 1, H, W)) > 0.5).astype(jnp.float32)
    mask_pred = jax.nn.sigmoid(jax.random.normal(ks[7], (B, 1, H, W), jnp.float32))
    valid_pixels = (jax.random.uniform(ks[8], (B, 1, H, W)) > 0.2).astype(jnp.float32)

    deformations_gt = jax.random.normal(ks[9], (B, G, 3), jnp.float32)
    deformations_pred = jax.random.normal(ks[10], (B, G, 3), jnp.float32)
    deformations_validity = jnp.ones((B, G), jnp.float32)
    valid_solve = jnp.ones((B,), jnp.float32)
    num_nodes_vec = jnp.full((B,), G, jnp.int32)

    loss = DeformLoss(lambda_flow=1.0, lambda_graph=1.0, lambda_warp=1.0,
                      lambda_mask=1.0, flow_loss_type="L2")

    d_total, d_flow, d_graph, d_warp, d_mask = loss(
        [flow_gt], [flow_pred], [flow_mask],
        deformations_gt, deformations_pred, deformations_validity,
        warped_points_gt, warped_points_pred, warped_points_mask,
        valid_solve, num_nodes_vec, mask_pred, mask_gt, valid_pixels,
        evaluate=True)

    jax.block_until_ready(d_total)
    assert d_total.shape == (1,)
    assert bool(jnp.isfinite(d_total).all())
    assert bool(jnp.isfinite(d_flow)) and bool(jnp.isfinite(d_warp)) and bool(jnp.isfinite(d_mask))
    print("KERNEL_OK")
</pallas_src>

<mosaic_0001>
module attributes {stable_mosaic.version = 11 : i64} {
  func.func @kernel(%arg0: i32, %arg1: i32, %arg2: memref<1x2x8x128xf32, #tpu.memory_space<vmem>>, %arg3: memref<1x2x8x128xf32, #tpu.memory_space<vmem>>, %arg4: memref<1x8x128xf32, #tpu.memory_space<vmem>>, %arg5: memref<1x8x128xf32, #tpu.memory_space<vmem>>, %arg6: memref<1x8x128xf32, #tpu.memory_space<vmem>>, %arg7: memref<8x128xf32, #tpu.memory_space<vmem>>, %arg8: memref<8x128xf32, #tpu.memory_space<vmem>>) attributes {dimension_semantics = [#tpu.dimension_semantics<parallel>, #tpu.dimension_semantics<arbitrary>], iteration_bounds = array<i64: 2, 1>, scalar_prefetch = 0 : i64, scratch_operands = 2 : i64, tpu.core_type = #tpu.core_type<tc>, window_params = [{transform_indices = @transform_0, window_bounds = array<i64: 1, 2, 8, 128>}, {transform_indices = @transform_1, window_bounds = array<i64: 1, 2, 8, 128>}, {transform_indices = @transform_2, window_bounds = array<i64: 1, 8, 128>}, {transform_indices = @transform_3, window_bounds = array<i64: 1, 8, 128>}, {transform_indices = @transform_4, window_bounds = array<i64: 1, 8, 128>}]} {
    %c0_i32 = arith.constant 0 : i32
    %0 = arith.cmpi eq, %arg1, %c0_i32 : i32
    %1 = arith.extui %0 : i1 to i32
    %c0_i32_0 = arith.constant 0 : i32
    %2 = arith.cmpi ne, %1, %c0_i32_0 : i32
    scf.if %2 {
      %cst_29 = arith.constant 0.000000e+00 : f32
      %33 = vector.broadcast %cst_29 : f32 to vector<8x128xf32>
      %c0_30 = arith.constant 0 : index
      %c0_31 = arith.constant 0 : index
      %34 = vector.load %arg7[%c0_30, %c0_31] : memref<8x128xf32, #tpu.memory_space<vmem>>, vector<8x128xf32>
      tpu.vector_store %arg7[%c0_30, %c0_31], %33 {strides = array<i32>} : memref<8x128xf32, #tpu.memory_space<vmem>>, vector<8x128xf32>,
      %cst_32 = arith.constant 0.000000e+00 : f32
      %35 = vector.broadcast %cst_32 : f32 to vector<8x128xf32>
      %c0_33 = arith.constant 0 : index
      %c0_34 = arith.constant 0 : index
      %36 = vector.load %arg8[%c0_33, %c0_34] : memref<8x128xf32, #tpu.memory_space<vmem>>, vector<8x128xf32>
      tpu.vector_store %arg8[%c0_33, %c0_34], %35 {strides = array<i32>} : memref<8x128xf32, #tpu.memory_space<vmem>>, vector<8x128xf32>,
    } else {
    }
    %c0 = arith.constant 0 : index
    %c0_1 = arith.constant 0 : index
    %c0_2 = arith.constant 0 : index
    %3 = vector.load %arg4[%c0, %c0_1, %c0_2] : memref<1x8x128xf32, #tpu.memory_space<vmem>>, vector<1x8x128xf32>
    %4 = vector.shape_cast %3 : vector<1x8x128xf32> to vector<8x128xf32>
    %c0_3 = arith.constant 0 : index
    %c0_4 = arith.constant 0 : index
    %c0_5 = arith.constant 0 : index
    %c0_6 = arith.constant 0 : index
    %5 = vector.load %arg3[%c0_3, %c0_4, %c0_5, %c0_6] : memref<1x2x8x128xf32, #tpu.memory_space<vmem>>, vector<1x1x8x128xf32>
    %6 = vector.shape_cast %5 : vector<1x1x8x128xf32> to vector<8x128xf32>
    %c0_7 = arith.constant 0 : index
    %c0_8 = arith.constant 0 : index
    %c0_9 = arith.constant 0 : index
    %c0_10 = arith.constant 0 : index
    %7 = vector.load %arg2[%c0_7, %c0_8, %c0_9, %c0_10] : memref<1x2x8x128xf32, #tpu.memory_space<vmem>>, vector<1x1x8x128xf32>
    %8 = vector.shape_cast %7 : vector<1x1x8x128xf32> to vector<8x128xf32>
    %9 = arith.subf %6, %8 : vector<8x128xf32>
    %10 = arith.mulf %9, %9 : vector<8x128xf32>
    %c0_11 = arith.constant 0 : index
    %c1 = arith.constant 1 : index
    %c0_12 = arith.constant 0 : index
    %c0_13 = arith.constant 0 : index
    %11 = vector.load %arg3[%c0_11, %c1, %c0_12, %c0_13] : memref<1x2x8x128xf32, #tpu.memory_space<vmem>>, vector<1x1x8x128xf32>
    %12 = vector.shape_cast %11 : vector<1x1x8x128xf32> to vector<8x128xf32>
    %c0_14 = arith.constant 0 : index
    %c1_15 = arith.constant 1 : index
    %c0_16 = arith.constant 0 : index
    %c0_17 = arith.constant 0 : index
    %13 = vector.load %arg2[%c0_14, %c1_15, %c0_16, %c0_17] : memref<1x2x8x128xf32, #tpu.memory_space<vmem>>, vector<1x1x8x128xf32>
    %14 = vector.shape_cast %13 : vector<1x1x8x128xf32> to vector<8x128xf32>
    %15 = arith.subf %12, %14 : vector<8x128xf32>
    %16 = arith.mulf %15, %15 : vector<8x128xf32>
    %17 = arith.addf %10, %16 : vector<8x128xf32>
    %18 = math.sqrt %17 : vector<8x128xf32>
    %19 = arith.mulf %18, %4 : vector<8x128xf32>
    %c0_18 = arith.constant 0 : index
    %c0_19 = arith.constant 0 : index
    %20 = vector.load %arg7[%c0_18, %c0_19] : memref<8x128xf32, #tpu.memory_space<vmem>>, vector<8x128xf32>
    %21 = vector.shape_cast %19 : vector<8x128xf32> to vector<1x8x128xf32>
    %cst = arith.constant dense<0.000000e+00> : vector<8x128xf32>
    %22 = vector.multi_reduction <add>, %21, %cst [0] : vector<1x8x128xf32> to vector<8x128xf32>
    %23 = arith.addf %20, %22 : vector<8x128xf32>
    %c0_20 = arith.constant 0 : index
    %c0_21 = arith.constant 0 : index
    %24 = vector.load %arg7[%c0_20, %c0_21] : memref<8x128xf32, #tpu.memory_space<vmem>>, vector<8x128xf32>
    tpu.vector_store %arg7[%c0_20, %c0_21], %23 {strides = array<i32>} : memref<8x128xf32, #tpu.memory_space<vmem>>, vector<8x128xf32>,
    %c0_22 = arith.constant 0 : index
    %c0_23 = arith.constant 0 : index
    %25 = vector.load %arg8[%c0_22, %c0_23] : memref<8x128xf32, #tpu.memory_space<vmem>>, vector<8x128xf32>
    %26 = vector.shape_cast %4 : vector<8x128xf32> to vector<1x8x128xf32>
    %cst_24 = arith.constant dense<0.000000e+00> : vector<8x128xf32>
    %27 = vector.multi_reduction <add>, %26, %cst_24 [0] : vector<1x8x128xf32> to vector<8x128xf32>
    %28 = arith.addf %25, %27 : vector<8x128xf32>
    %c0_25 = arith.constant 0 : index
    %c0_26 = arith.constant 0 : index
    %29 = vector.load %arg8[%c0_25, %c0_26] : memref<8x128xf32, #tpu.memory_space<vmem>>, vector<8x128xf32>
    tpu.vector_store %arg8[%c0_25, %c0_26], %28 {strides = array<i32>} : memref<8x128xf32, #tpu.memory_space<vmem>>, vector<8x128xf32>,
    %c0_i32_27 = arith.constant 0 : i32
    %30 = arith.cmpi eq, %arg1, %c0_i32_27 : i32
    %31 = arith.extui %30 : i1 to i32
    %c0_i32_28 = arith.constant 0 : i32
    %32 = arith.cmpi ne, %31, %c0_i32_28 : i32
    scf.if %32 {
      %c0_29 = arith.constant 0 : index
      %c0_30 = arith.constant 0 : index
      %33 = vector.load %arg7[%c0_29, %c0_30] : memref<8x128xf32, #tpu.memory_space<vmem>>, vector<8x128xf32>
      %c0_31 = arith.constant 0 : index
      %c0_32 = arith.constant 0 : index
      %c0_33 = arith.constant 0 : index
      %34 = vector.load %arg5[%c0_31, %c0_32, %c0_33] : memref<1x8x128xf32, #tpu.memory_space<vmem>>, vector<1x8x128xf32>
      %35 = vector.shape_cast %34 : vector<1x8x128xf32> to vector<8x128xf32>
      %36 = vector.shape_cast %33 : vector<8x128xf32> to vector<1x8x128xf32>
      tpu.vector_store %arg5[%c0_31, %c0_32, %c0_33], %36 {strides = array<i32>} : memref<1x8x128xf32, #tpu.memory_space<vmem>>, vector<1x8x128xf32>,
      %c0_34 = arith.constant 0 : index
      %c0_35 = arith.constant 0 : index
      %37 = vector.load %arg8[%c0_34, %c0_35] : memref<8x128xf32, #tpu.memory_space<vmem>>, vector<8x128xf32>
      %c0_36 = arith.constant 0 : index
      %c0_37 = arith.constant 0 : index
      %c0_38 = arith.constant 0 : index
      %38 = vector.load %arg6[%c0_36, %c0_37, %c0_38] : memref<1x8x128xf32, #tpu.memory_space<vmem>>, vector<1x8x128xf32>
      %39 = vector.shape_cast %38 : vector<1x8x128xf32> to vector<8x128xf32>
      %40 = vector.shape_cast %37 : vector<8x128xf32> to vector<1x8x128xf32>
      tpu.vector_store %arg6[%c0_36, %c0_37, %c0_38], %40 {strides = array<i32>} : memref<1x8x128xf32, #tpu.memory_space<vmem>>, vector<1x8x128xf32>,
    } else {
    }
    return
  }
  func.func @transform_0(%arg0: i32, %arg1: i32) -> (i32, i32, i32, i32) {
    %c0_i32 = arith.constant 0 : i32
    %c0_i32_0 = arith.constant 0 : i32
    %c0_i32_1 = arith.constant 0 : i32
    return %arg0, %c0_i32, %arg1, %c0_i32_0 : i32, i32, i32, i32
  }
  func.func @transform_1(%arg0: i32, %arg1: i32) -> (i32, i32, i32, i32) {
    %c0_i32 = arith.constant 0 : i32
    %c0_i32_0 = arith.constant 0 : i32
    %c0_i32_1 = arith.constant 0 : i32
    return %arg0, %c0_i32, %arg1, %c0_i32_0 : i32, i32, i32, i32
  }
  func.func @transform_2(%arg0: i32, %arg1: i32) -> (i32, i32, i32) {
    %c0_i32 = arith.constant 0 : i32
    %c0_i32_0 = arith.constant 0 : i32
    return %arg0, %arg1, %c0_i32 : i32, i32, i32
  }
  func.func @transform_3(%arg0: i32, %arg1: i32) -> (i32, i32, i32) {
    %c0_i32 = arith.constant 0 : i32
    %c0_i32_0 = arith.constant 0 : i32
    %c0_i32_1 = arith.constant 0 : i32
    return %arg0, %c0_i32, %c0_i32_0 : i32, i32, i32
  }
  func.func @transform_4(%arg0: i32, %arg1: i32) -> (i32, i32, i32) {
    %c0_i32 = arith.constant 0 : i32
    %c0_i32_0 = arith.constant 0 : i32
    %c0_i32_1 = arith.constant 0 : i32
    return %arg0, %c0_i32, %c0_i32_0 : i32, i32, i32
  }
}

</mosaic_0001>

<bundles_post_ra>
// kernel: tpu_custom_call.1
= control target key start
LH: loop header
LB: loop body
LE: loop exit
PB: predicated region body
PF: predicated region fallthrough
CT: control target
= control target key end

     0   :  { %s1099_s0 = inlined_call_operand.hbm [shape: f32[2,2,8,128], index: 0, kind: input, shape index: {}]   ;;  %s1100_s1 = inlined_call_operand.hbm [shape: f32[2,2,8,128], index: 1, kind: input, shape index: {}]   ;;  %s1101_s2 = inlined_call_operand.hbm [shape: f32[2,8,128], index: 2, kind: input, shape index: {}]   ;;  %s1102_s3 = inlined_call_operand.hbm [shape: f32[2,8,128], index: 3, kind: output, shape index: {0}]   ;;  %s1103_s4 = inlined_call_operand.hbm [shape: f32[2,8,128], index: 4, kind: output, shape index: {1}]  }
   0x1   :  { %1113 = sst [smem:[#allocation24_spill]] %s1100_s1 }
   0x2   :  { %1114 = sst [smem:[#allocation25_spill]] %s1102_s3 }
   0x3   :  { %10 = vsyncpa [#allocation5], 0 }
   0x4   :  { %12 = vsyncpa [#allocation5 + $0x1], 0 }
   0x5   :  { %13 = vsyncpa [#allocation8], 0 }
   0x6   :  { %15 = vsyncpa [#allocation8 + $0x1], 0 }
   0x7   :  { %16 = vsyncpa [#allocation6], 0 }
   0x8   :  { %18 = vsyncpa [#allocation6 + $0x1], 0 }
   0x9   :  { %19 = vsyncpa [#allocation12], 0 }
   0xa   :  { %21 = vsyncpa [#allocation12 + $0x1], 0  ;;  %s914_s15 = smov 0   ;;  %s916_s16 = smov 0  }
   0xb   :  { %s918_s17 = smov 0   ;;  %s920_s18 = smov 0  }
   0xc   :  { %s922_s19 = smov 0   ;;  %s924_s20 = smov 0  }
   0xd LB: > { %1115 = sst [smem:[#allocation17_spill]] %s865_s15  ;;  %s945_s21 = sadd.s32 4294967295, %s885_s20   ;;  %s885_s20 = sphi %s924_s20, %s27_s20   ;;  %s881_s19 = sphi %s922_s19, %s1141_s19   ;;  %s877_s18 = sphi %s920_s18, %s1140_s18   ;;  %s873_s17 = sphi %s918_s17, %s1136_s17   ;;  %s869_s16 = sphi %s916_s16, %s1139_s16   ;;  %s865_s15 = sphi %s914_s15, %s1138_s15  }
   0xe   : > { %1116 = sst [smem:[#allocation18_spill]] %s873_s17  ;;  %s569_s22 = sadd.s32 4294967294, %s885_s20  }
   0xf   : > { %1117 = sst [smem:[#allocation19_spill]] %s885_s20  ;;  %s39_s23 = sadd.s32 1, %s881_s19 }
  0x10   : > { %s48_s24 = sadd.s32 1, %s873_s17  ;;  %p41_p0 = scmp.ge.s32.totalorder %s39_s23, 2 }
  0x11   : > { %p55_p1 = scmp.ne.s32.totalorder %s873_s17, %s869_s16  ;;  %p56_p2 = scmp.eq.s32.totalorder %s885_s20, 0 }
  0x12   : > { %p61_p3 = scmp.ne.s32.totalorder %s869_s16, %s865_s15  ;;  %s1143_s23 = smov (%p41_p0, %s39_s23), 0 }
  0x13   : > { %1118 = sst [smem:[#allocation20_spill]] %s1143_s23  ;;  %p957_p4 = por %p56_p2, %p55_p1 }
  0x14   : > { %p62_p5 = scmp.eq.s32.totalorder %s945_s21, 0  ;;  %s43_s26 = ssub.s32 %s881_s19, %s1143_s23 }
  0x15   : > { %p141_p6 = scmp.eq.s32.totalorder %s945_s21, 1  ;;  %p46_p7 = scmp.eq.s32.totalorder %s43_s26, 0 }
  0x16   : > { %p965_p8 = por %p62_p5, %p61_p3  ;;  %p147_p10 = scmp.eq.s32.totalorder %s569_s22, 1 }
  0x17   : > { %p969_p9 = por %p141_p6, %p55_p1  ;;  %p571_p12 = scmp.ge.s32.totalorder %s885_s20, 2 }
  0x18   : > { %s974_s29 = scalar_select %p46_p7, %s873_s17, %s48_s24  }
  0x19   : > { %s1121_s28 = scalar_select %p969_p9, 1, 0 }
  0x1a   : > { %1123 = sst [smem:[#allocation22_spill]] %s974_s29  ;;  %p976_p11 = por %p147_p10, %p61_p3 }
  0x1b   : > { %1122 = sst [smem:[#allocation21_spill]] %s1121_s28  ;;  %p623_p13 = scmp.lt.s32.totalorder %s885_s20, 2 }
  0x1c   : > { %s1124_s30 = scalar_select %p976_p11, 1, 0 }
  0x1d   : > { %s983_s5 = sand.u32 1, %s873_s17   ;;  %s594_s7 = sshll.u32 %s881_s19, 4 }
  0x1e   : > { %1125 = sst [smem:[#allocation23_spill]] %s1124_s30  ;;  %s572_s6 = sshll.u32 %s983_s5, 4 }
  0x1f   : > { %p989_p0 = pnand %p623_p13, %p957_p4  ;;  %s216_s9 = sand.u32 1, %s885_s20  }
  0x20   : > { %s1127_s1 = sld [smem:[#allocation24_spill]]  ;;  %s220_s14 = scalar_lea.vmem [#allocation7], %s572_s6 }
  0x21   : > { %s229_s22 = sshll.u32 %s220_s14, 4  ;;  %s217_s24 = scalar_lea.sflag [#allocation8], %s216_s9  ;;  %s230_s22 = int_to_ptr.vmem [resolvable:$true] %s229_s22 }
  0x22   : > { %s887_s25 = smov 128   ;;  %s888_s26 = smov 8  }
  0x23   : > { %p580_p1 = scmp.ge.s32.totalorder %s885_s20, 1  ;;  %p257_p2 = scmp.lt.s32.totalorder %s885_s20, 3 }
  0x24   : > { %s194_s9 = scalar_lea.sflag [#allocation5], %s983_s5 }
  0x25   : > { %p1001_p3 = pnand %p580_p1, %p257_p2 }
  0x26   : > { %s226_s12 = scalar_lea.hbm %s1127_s1, %s594_s7  ;;  %s197_s1 = scalar_lea.vmem [#allocation4], %s572_s6 }
  0x27   : > { %s227_s13 = sshll.u32 %s226_s12, 4  ;;  %s203_s12 = scalar_lea.hbm %s1099_s0, %s594_s7  ;;  %s228_s13 = int_to_ptr.hbm [resolvable:$true] %s227_s13 }
  0x28   : > { %612 = dma.hbm_to_vmem [thread:$0]  (!%p989_p0), %s228_s13, 256, %s230_s22, %s217_s24, %s887_s25, %s887_s25, %s888_s26  }
  0x29   : > { %s204_s14 = sshll.u32 %s203_s12, 4  ;;  %s206_s29 = sshll.u32 %s197_s1, 4  ;;  %s205_s14 = int_to_ptr.hbm [resolvable:$true] %s204_s14  ;;  %s207_s29 = int_to_ptr.vmem [resolvable:$true] %s206_s29 }
  0x2a   : > { %609 = dma.hbm_to_vmem [thread:$0]  (!%p989_p0), %s205_s14, 256, %s207_s29, %s194_s9, %s887_s25, %s887_s25, %s888_s26  }
  0x2b   : > { %s578_s13 = sshll.u32 %s983_s5, 3  ;;  %s579_s22 = sshll.u32 %s881_s19, 3 }
  0x2c   : > { %s248_s30 = scalar_lea.hbm %s1101_s2, %s579_s22  ;;  %s243_s3 = scalar_lea.vmem [#allocation9], %s578_s13 }
  0x2d   : > { %s250_s15 = sshll.u32 %s248_s30, 4  ;;  %s252_s28 = sshll.u32 %s243_s3, 4  ;;  %s251_s15 = int_to_ptr.hbm [resolvable:$true] %s250_s15  ;;  %s253_s28 = int_to_ptr.vmem [resolvable:$true] %s252_s28 }
  0x2e   : > { %615 = dma.hbm_to_vmem [thread:$0]  (!%p989_p0), %s251_s15, 128, %s253_s28, %s217_s24  }
  0x2f   : > { %261 = sbr.rel (%p1001_p3) target bundleno = 101 (0x65), region = 32  ;;  %s1021_s1 = sand.u32 (!%p1001_p3), 1, %s869_s16  }
  0x30   : > { %s581_s29 = sshll.u32 (!%p1001_p3), %s1021_s1, 4  ;;  %s264_s5 = scalar_lea.sflag (!%p1001_p3), [#allocation5], %s1021_s1 }
  0x31   : > { %s267_s17 = scalar_lea.vmem (!%p1001_p3), [#allocation4], %s581_s29 }
  0x34   : > { %848 = dma.done.wait (%p965_p8), %s264_s5, 256  }
  0x35   : > { %850 = vsyncadd (%p965_p8), %s264_s5, 4294967040  ;;  %s273_s3 = sand.u32 1, %s945_s21   ;;  %s277_s20 = scalar_lea.vmem [#allocation7], %s581_s29 }
  0x36   : > { %s274_s15 = scalar_lea.sflag [#allocation8], %s273_s3 }
  0x37   : > { %852 = dma.done.wait (%p965_p8), %s274_s15, 384  }
  0x38   : > { %854 = vsyncadd (%p965_p8), %s274_s15, 4294966912  ;;  %s1035_s23 = sshll.u32 %s1021_s1, 3  ;;  %s590_s21 = sshll.u32 %s877_s18, 3  ;;  %v335_v1 = vld [vmem:[%s277_s20] sm:$0xff]  ;;  %v586_v4 = vld [vmem:[%s277_s20 + $0x8] sm:$0xff] }
  0x39   : > { %s327_s28 = scalar_lea.vmem [#allocation11], %s1035_s23  ;;  %s404_s27 = scalar_lea.hbm %s1103_s4, %s590_s21  ;;  %v336_v2 = vld [vmem:[%s267_s17] sm:$0xff]  ;;  %v587_v5 = vld [vmem:[%s267_s17 + $0x8] sm:$0xff] }
  0x3a   : > { %s1038_s30 = sshll.u32 %s327_s28, 4  ;;  %s287_s8 = scalar_lea.vmem [#allocation9], %s1035_s23  ;;  %v337_v3 = vsub.f32 %v335_v1, %v336_v2  ;;  %v343_v6 = vsub.f32 %v586_v4, %v587_v5  ;;  %s407_s30 = int_to_ptr.vmem [resolvable:$true] %s1038_s30 }
  0x3b   : > { %v334_v0 = vld [vmem:[%s287_s8] sm:$0xff]  ;;  %s408_s25 = sshll.u32 %s404_s27, 4  ;;  %s380_s26 = scalar_lea.sflag [#allocation12], %s1021_s1  ;;  %s409_s25 = int_to_ptr.hbm [resolvable:$true] %s408_s25 }
  0x3c   : > { %373 = vst [vmem:[%s327_s28] sm:$0xff] %v334_v0  ;;  %s781_s10 = sshra.s32 %s409_s25, 4  ;;  %s787_s9 = scalar_lea.hbm %s1103_s4, 16  ;;  %s782_s10 = int_to_ptr.hbm [resolvable:$true] %s781_s10 }
  0x3d   : > { %s783_s11 = scalar_lea.hbm %s782_s10, 8  ;;  %p788_p7 = scmp.lt.s32.totalorder %s782_s10, %s1103_s4 }
  0x3e   : > { %p784_p4 = scmp.ne.s32.totalorder %s782_s10, %s783_s11  ;;  %p789_p8 = scmp.lt.s32.totalorder %s787_s9, %s783_s11 }
  0x40   : > { %p785_p5 = pnand %p784_p4, %p969_p9  ;;  %p790_p10 = por %p789_p8, %p788_p7 }
  0x42   : > { %p786_p6 = pneg %p785_p5 }
  0x44   : > { %p791_p13 = pnand %p790_p10, %p786_p6 }
  0x46   : > { %794 = shalt.err (!%p791_p13)
}
  0x47   : > { %603 = dma.vmem_to_hbm [thread:$0]  (%p969_p9), %s407_s30, 128, %s409_s25, %s380_s26   ;;  %v338_v7 = vmul.f32 %v337_v3, %v337_v3  ;;  %v344_v8 = vmul.f32 %v343_v6, %v343_v6 }
  0x48   : > { %s1130_s17 = sld [smem:[#allocation25_spill]]  ;;  %s320_s20 = scalar_lea.vmem [#allocation10], %s1035_s23 }
  0x49   : > { %v345_v9 = vadd.f32 %v344_v8, %v338_v7  ;;  %s392_s28 = sshll.u32 %s320_s20, 4  ;;  %s375_s6 = scalar_lea.sflag [#allocation6], %s1021_s1  ;;  %s393_s28 = int_to_ptr.vmem [resolvable:$true] %s392_s28 }
  0x4b   : > { %675 = vrsqrt.f32 %v345_v9  ;;  %vm353_vm0 = vcmp.eq.f32.partialorder %v345_v9, inf  ;;  %v356_v16 = vand.u32 2147483648, %v345_v9  ;;  %vm355_vm1 = vcmp.eq.f32.partialorder %v345_v9, 0.0 }
  0x4e   : > { %s1131_s3 = smov %s1130_s17  ;;  %s390_s15 = scalar_lea.hbm %s1130_s17, %s590_s21 }
  0x4f   : > { %s394_s30 = sshll.u32 %s390_s15, 4  ;;  %s815_s23 = scalar_lea.hbm %s1131_s3, 16  ;;  %s395_s30 = int_to_ptr.hbm [resolvable:$true] %s394_s30 }
  0x50   : > { %s809_s18 = sshra.s32 %s395_s30, 4  ;;  %s810_s18 = int_to_ptr.hbm [resolvable:$true] %s809_s18 }
  0x51   : > { %v676_v10 = vpop.eup %675  ;;  %s811_s7 = scalar_lea.hbm %s810_s18, 8  ;;  %p816_p3 = scmp.lt.s32.totalorder %s810_s18, %s1131_s3 }
  0x52   : > { %v347_v11 = vmul.f32 %v676_v10, %v345_v9  ;;  %p812_p0 = scmp.ne.s32.totalorder %s810_s18, %s811_s7  ;;  %p817_p4 = scmp.lt.s32.totalorder %s815_s23, %s811_s7 }
  0x54   : > { %v348_v12 = vmul.f32 %v676_v10, %v347_v11  ;;  %p813_p1 = pnand %p812_p0, %p969_p9  ;;  %p818_p5 = por %p817_p4, %p816_p3 }
  0x56   : > { %v349_v13 = vmul.f32 0.5, %v348_v12  ;;  %p814_p2 = pneg %p813_p1 }
  0x58   : > { %v350_v14 = vsub.f32 1.5, %v349_v13  ;;  %p819_p6 = pnand %p818_p5, %p814_p2 }
  0x5a   : > { %v351_v15 = vmul.f32 %v676_v10, %v350_v14 }
  0x5c   : > { %v352_v17 = vmul.f32 %v351_v15, %v345_v9 }
  0x5e   : > { %v354_v18 = vsel %vm353_vm0, %v345_v9, %v352_v17 }
  0x5f   : > { %v357_v19 = vsel %vm355_vm1, %v356_v16, %v354_v18 }
  0x60   : > { %v358_v20 = vmul.f32 %v357_v19, %v334_v0 }
  0x62   : > { %371 = vst [vmem:[%s320_s20] sm:$0xff] %v358_v20 }
  0x63   : > { %822 = shalt.err (!%p819_p6)
}
  0x64   : > { %602 = dma.vmem_to_hbm [thread:$0]  (%p969_p9), %s393_s28, 128, %s395_s30, %s375_s6  }
  0x65 PF: > { %s1132_s1 = sld [smem:[#allocation17_spill]]  ;;  %p617_p7 = pnand %p571_p12, %p976_p11 }
  0x66   : > { %s1134_s10 = sld [smem:[#allocation19_spill]] }
  0x67   : > { %p618_p8 = pneg %p617_p7 }
  0x6b   : > { %s420_s11 = sand.u32 1, %s1132_s1  }
  0x6c   : > { %s421_s12 = scalar_lea.sflag [#allocation6], %s420_s11 }
  0x6d   : > { %856 = dma.done.wait (%p618_p8), %s421_s12, 128  }
  0x6e   : > { %858 = vsyncadd (%p618_p8), %s421_s12, 4294967168  ;;  %s431_s14 = scalar_lea.sflag [#allocation12], %s420_s11 }
  0x6f   : > { %860 = dma.done.wait (%p618_p8), %s431_s14, 128  }
  0x70   : > { %862 = vsyncadd (%p618_p8), %s431_s14, 4294967168  ;;  %s27_s20 = sadd.s32 1, %s1134_s10   ;;  %s1135_s24 = sld [smem:[#allocation18_spill]] }
  0x71   : > { %p24_p10 = scmp.ge.s32.totalorder %s27_s20, 4   ;;  %s1136_s17 = sld [smem:[#allocation22_spill]] }
  0x72   : > { %s1137_s9 = sld [smem:[#allocation20_spill]]  ;;  %s1138_s15 = smov %s869_s16 }
  0x73   : > { %s1140_s18 = smov %s881_s19 }
  0x74   :  { %26 = sbr.rel (!%p24_p10) target bundleno = 13 (0xd), region = 128 }
  0x76   : > { %s1139_s16 = smov %s1135_s24 }
  0x78   : > { %s1141_s19 = smov %s1137_s9 }
  0x79   :  { %437 = vsyncpa [#allocation5], 1 }
  0x7a   :  { %439 = vsyncpa [#allocation5 + $0x1], 1 }
  0x7b   :  { %440 = vsyncpa [#allocation8], 1 }
  0x7c   :  { %442 = vsyncpa [#allocation8 + $0x1], 1 }
  0x7d   :  { %443 = vsyncpa [#allocation6], 1 }
  0x7e   :  { %445 = vsyncpa [#allocation6 + $0x1], 1 }
  0x7f   :  { %446 = vsyncpa [#allocation12], 1 }
  0x80   :  { %448 = vsyncpa [#allocation12 + $0x1], 1 }

</bundles_post_ra>
